<compile_context>
chip_gen: v7x
topology: tpu7x:2x2x1
jax: 0.10.0
libtpu: 0.0.40
codegen_flags: <defaults>
</compile_context>

<pallas_src>
import jax
import jax.numpy as jnp
from jax.experimental import pallas as pl
from jax.experimental.pallas import tpu as pltpu

EPS = 1e-5
DROP_P = 0.1
_DROP_THRESH = int(round(DROP_P * (1 << 23)))   # dropout compare on 23 uniform bits
_VMEM_LIMIT = 48 * 1024 * 1024                  # < 64 MiB physical on v7x


def _mlp_kernel(seed_ref, x_ref, w1_ref, w2_ref, aux_ref, out_ref):
    """Fused forward pass in feature-major (lane-dense batch) layout.

    seed_ref: (1,)    int32  SMEM
    x_ref   : (8,  N) f32    batch on the 128-lane axis
    w1_ref  : (16, 8) f32    PyTorch (out, in) layout, used directly as W @ x
    w2_ref  : (16,16) f32
    aux_ref : (16, 8) f32    packed params, columns:
              0:b1 1:g1 2:be1 3:b2 4:g2 5:be2 6:w3*(1/(1-p)) 7:[b3,0,...]
    out_ref : (1,  N) f32
    """
    n = x_ref.shape[1]
    inv_n = 1.0 / float(n)

    b1, g1, be1 = aux_ref[:, 0:1], aux_ref[:, 1:2], aux_ref[:, 2:3]
    b2, g2, be2 = aux_ref[:, 3:4], aux_ref[:, 4:5], aux_ref[:, 5:6]
    w3s = aux_ref[:, 6:7]            # (16, 1), pre-scaled by 1/(1-p)
    b3 = aux_ref[0:1, 7:8]           # (1, 1)

    x = x_ref[...]                                                   # (8, N)

    # ---- linear1 + ReLU (MXU) ------------------------------------------
    h = jnp.dot(w1_ref[...], x, preferred_element_type=jnp.float32)  # (16, N)
    h = jnp.maximum(h + b1, 0.0)

    # ---- batchnorm1: batch stats (biased var) folded into one FMA --------
    s = jnp.sum(h, axis=1, keepdims=True)                            # (16, 1)
    q = jnp.sum(h * h, axis=1, keepdims=True)
    mean = s * inv_n
    var = q * inv_n - mean * mean
    scale = g1 * jax.lax.rsqrt(var + EPS)
    shift = be1 - mean * scale
    h = h * scale + shift

    # ---- linear2 + ReLU (MXU) --------------------------------------------
    h = jnp.dot(w2_ref[...], h, preferred_element_type=jnp.float32)  # (16, N)
    h = jnp.maximum(h + b2, 0.0)

    # ---- batchnorm2 ---------------------------------------------------------
    s = jnp.sum(h, axis=1, keepdims=True)
    q = jnp.sum(h * h, axis=1, keepdims=True)
    mean = s * inv_n
    var = q * inv_n - mean * mean
    scale = g2 * jax.lax.rsqrt(var + EPS)
    shift = be2 - mean * scale
    h = h * scale + shift

    # ---- dropout(p=0.1), training semantics ----------------------------------
    # Counter-based integer hash at exactly h.shape; seed from SMEM.
    # TODO(synk): RNG stream differs from torch.nn.Dropout; statistics match.
    seed = seed_ref[0].astype(jnp.uint32)
    row = jax.lax.broadcasted_iota(jnp.int32, h.shape, 0)
    col = jax.lax.broadcasted_iota(jnp.int32, h.shape, 1)
    z = (row * n + col).astype(jnp.uint32) + seed * jnp.uint32(0x9E3779B9)
    z = (z ^ (z >> 16)) * jnp.uint32(0x7FEB352D)
    z = (z ^ (z >> 15)) * jnp.uint32(0x846CA68B)
    z = z ^ (z >> 16)
    rnd = (z & jnp.uint32(0x7FFFFF)).astype(jnp.int32)               # 23 bits
    h = jnp.where(rnd >= _DROP_THRESH, h, 0.0)   # 1/(1-p) is folded into w3s

    # ---- linear3 (16 -> 1): VPU multiply + sublane reduce (skip the MXU) -----
    out_ref[...] = jnp.sum(h * w3s, axis=0, keepdims=True) + b3      # (1, N)


def _pack_aux(params):
    """Pack all small per-feature parameters into one (16, 8) f32 array."""
    w3_scaled = params["w3"].reshape(16) * (1.0 / (1.0 - DROP_P))
    b3_col = jnp.zeros((16,), jnp.float32).at[0].set(params["b3"].reshape(()))
    return jnp.stack(
        [params["b1"], params["g1"], params["be1"],
         params["b2"], params["g2"], params["be2"],
         w3_scaled, b3_col],
        axis=1,
    ).astype(jnp.float32)                                            # (16, 8)


def model_forward(x, params, seed=0):
    """x: (N, 8) f32 (PyTorch layout).  Returns (N, 1) f32 (training-mode fwd)."""
    n = x.shape[0]

    # Rough working-set check for the single-block form (fits easily on
    # v5e/v6e/v7x up to ~100K rows).  Larger batches need the tiled 3-pass
    # pipeline.  TODO(synk): implement tiled variant for N beyond VMEM.
    est_bytes = n * (32 + 6 * 64 + 4) + (64 << 10)
    assert est_bytes < 40 * 1024 * 1024, (
        "batch too large for the single-block kernel; use a tiled 3-pass "
        "pipeline for batches that do not fit VMEM")

    x_t = jnp.transpose(x)              # (8, N) — layout plumbing, outside kernel
    aux = _pack_aux(params)
    seed_arr = jnp.asarray([seed], dtype=jnp.int32)

    out_t = pl.pallas_call(
        _mlp_kernel,
        out_shape=jax.ShapeDtypeStruct((1, n), jnp.float32),
        in_specs=[
            pl.BlockSpec(memory_space=pltpu.MemorySpace.SMEM),   # seed
            pl.BlockSpec(memory_space=pltpu.MemorySpace.VMEM),   # x^T
            pl.BlockSpec(memory_space=pltpu.MemorySpace.VMEM),   # w1 (16, 8)
            pl.BlockSpec(memory_space=pltpu.MemorySpace.VMEM),   # w2 (16, 16)
            pl.BlockSpec(memory_space=pltpu.MemorySpace.VMEM),   # packed aux
        ],
        out_specs=pl.BlockSpec(memory_space=pltpu.MemorySpace.VMEM),
        compiler_params=pltpu.CompilerParams(vmem_limit_bytes=_VMEM_LIMIT),
    )(seed_arr, x_t, params["w1"], params["w2"], aux)

    return jnp.transpose(out_t)         # (N, 1), matching the PyTorch module


def init_params(key):
    """Deterministic init, PyTorch-native shapes: w = (out, in), b = (out,)."""
    ks = jax.random.split(key, 10)

    def lin(kw, kb, fan_in, fan_out):
        bound = 1.0 / jnp.sqrt(float(fan_in))
        w = jax.random.uniform(kw, (fan_out, fan_in), jnp.float32, -bound, bound)
        b = jax.random.uniform(kb, (fan_out,), jnp.float32, -bound, bound)
        return w, b

    w1, b1 = lin(ks[0], ks[1], 8, 16)
    w2, b2 = lin(ks[2], ks[3], 16, 16)
    w3, b3 = lin(ks[4], ks[5], 16, 1)
    # BatchNorm affine params (non-trivial so the path is exercised).
    g1 = 1.0 + 0.1 * jax.random.normal(ks[6], (16,), jnp.float32)
    be1 = 0.1 * jax.random.normal(ks[7], (16,), jnp.float32)
    g2 = 1.0 + 0.1 * jax.random.normal(ks[8], (16,), jnp.float32)
    be2 = 0.1 * jax.random.normal(ks[9], (16,), jnp.float32)
    return dict(w1=w1, b1=b1, w2=w2, b2=b2, w3=w3, b3=b3,
                g1=g1, be1=be1, g2=g2, be2=be2)


if __name__ == "__main__":
    key = jax.random.PRNGKey(0)
    k_x, k_p = jax.random.split(key)

    N = 16                               # small batch; in_features = 8
    x = jax.random.normal(k_x, (N, 8), jnp.float32)
    params = init_params(k_p)

    out = model_forward(x, params, seed=0)
    out = jax.block_until_ready(out)
    assert out.shape == (N, 1) and out.dtype == jnp.float32
    assert bool(jnp.all(jnp.isfinite(out)))
    print("KERNEL_OK")
</pallas_src>

<mosaic_0001>
module attributes {stable_mosaic.version = 11 : i64} {
  func.func @_mlp_kernel(%arg0: memref<1xi32, #tpu.memory_space<smem>>, %arg1: memref<8x16xf32, #tpu.memory_space<vmem>>, %arg2: memref<16x8xf32, #tpu.memory_space<vmem>>, %arg3: memref<16x16xf32, #tpu.memory_space<vmem>>, %arg4: memref<16x8xf32, #tpu.memory_space<vmem>>, %arg5: memref<1x16xf32, #tpu.memory_space<vmem>>) attributes {dimension_semantics = [], scalar_prefetch = 0 : i64, scratch_operands = 0 : i64, tpu.core_type = #tpu.core_type<tc>} {
    %c0 = arith.constant 0 : index
    %c0_0 = arith.constant 0 : index
    %0 = vector.load %arg4[%c0, %c0_0] : memref<16x8xf32, #tpu.memory_space<vmem>>, vector<16x1xf32>
    %c0_1 = arith.constant 0 : index
    %c1 = arith.constant 1 : index
    %1 = vector.load %arg4[%c0_1, %c1] : memref<16x8xf32, #tpu.memory_space<vmem>>, vector<16x1xf32>
    %c0_2 = arith.constant 0 : index
    %c2 = arith.constant 2 : index
    %2 = vector.load %arg4[%c0_2, %c2] : memref<16x8xf32, #tpu.memory_space<vmem>>, vector<16x1xf32>
    %c0_3 = arith.constant 0 : index
    %c3 = arith.constant 3 : index
    %3 = vector.load %arg4[%c0_3, %c3] : memref<16x8xf32, #tpu.memory_space<vmem>>, vector<16x1xf32>
    %c0_4 = arith.constant 0 : index
    %c4 = arith.constant 4 : index
    %4 = vector.load %arg4[%c0_4, %c4] : memref<16x8xf32, #tpu.memory_space<vmem>>, vector<16x1xf32>
    %c0_5 = arith.constant 0 : index
    %c5 = arith.constant 5 : index
    %5 = vector.load %arg4[%c0_5, %c5] : memref<16x8xf32, #tpu.memory_space<vmem>>, vector<16x1xf32>
    %c0_6 = arith.constant 0 : index
    %c6 = arith.constant 6 : index
    %6 = vector.load %arg4[%c0_6, %c6] : memref<16x8xf32, #tpu.memory_space<vmem>>, vector<16x1xf32>
    %c0_7 = arith.constant 0 : index
    %c7 = arith.constant 7 : index
    %7 = vector.load %arg4[%c0_7, %c7] : memref<16x8xf32, #tpu.memory_space<vmem>>, vector<1x1xf32>
    %c0_8 = arith.constant 0 : index
    %c0_9 = arith.constant 0 : index
    %8 = vector.load %arg1[%c0_8, %c0_9] : memref<8x16xf32, #tpu.memory_space<vmem>>, vector<8x16xf32>
    %c0_10 = arith.constant 0 : index
    %c0_11 = arith.constant 0 : index
    %9 = vector.load %arg2[%c0_10, %c0_11] : memref<16x8xf32, #tpu.memory_space<vmem>>, vector<16x8xf32>
    %cst = arith.constant dense<0.000000e+00> : vector<16x16xf32>
    %10 = tpu.matmul %9, %8, %cst {dimension_numbers = #tpu.dot_dimension_numbers<[1], [0], [0], [1], [0, 0, 1, 1], [], []>} : vector<16x8xf32>, vector<8x16xf32>, vector<16x16xf32> -> vector<16x16xf32>
    %11 = vector.broadcast %0 : vector<16x1xf32> to vector<16x16xf32>
    %12 = arith.addf %10, %11 : vector<16x16xf32>
    %cst_12 = arith.constant 0.000000e+00 : f32
    %13 = vector.broadcast %cst_12 : f32 to vector<16x16xf32>
    %14 = arith.maximumf %12, %13 : vector<16x16xf32>
    %cst_13 = arith.constant dense<0.000000e+00> : vector<16xf32>
    %15 = vector.multi_reduction <add>, %14, %cst_13 [1] : vector<16x16xf32> to vector<16xf32>
    %16 = vector.shape_cast %15 : vector<16xf32> to vector<16x1xf32>
    %17 = arith.mulf %14, %14 : vector<16x16xf32>
    %cst_14 = arith.constant dense<0.000000e+00> : vector<16xf32>
    %18 = vector.multi_reduction <add>, %17, %cst_14 [1] : vector<16x16xf32> to vector<16xf32>
    %19 = vector.shape_cast %18 : vector<16xf32> to vector<16x1xf32>
    %cst_15 = arith.constant 6.250000e-02 : f32
    %20 = vector.broadcast %cst_15 : f32 to vector<16x1xf32>
    %21 = arith.mulf %16, %20 : vector<16x1xf32>
    %cst_16 = arith.constant 6.250000e-02 : f32
    %22 = vector.broadcast %cst_16 : f32 to vector<16x1xf32>
    %23 = arith.mulf %19, %22 : vector<16x1xf32>
    %24 = arith.mulf %21, %21 : vector<16x1xf32>
    %25 = arith.subf %23, %24 : vector<16x1xf32>
    %cst_17 = arith.constant 9.99999974E-6 : f32
    %26 = vector.broadcast %cst_17 : f32 to vector<16x1xf32>
    %27 = arith.addf %25, %26 : vector<16x1xf32>
    %28 = math.rsqrt %27 : vector<16x1xf32>
    %29 = arith.mulf %1, %28 : vector<16x1xf32>
    %30 = arith.mulf %21, %29 : vector<16x1xf32>
    %31 = arith.subf %2, %30 : vector<16x1xf32>
    %32 = vector.broadcast %29 : vector<16x1xf32> to vector<16x16xf32>
    %33 = arith.mulf %14, %32 : vector<16x16xf32>
    %34 = vector.broadcast %31 : vector<16x1xf32> to vector<16x16xf32>
    %35 = arith.addf %33, %34 : vector<16x16xf32>
    %c0_18 = arith.constant 0 : index
    %c0_19 = arith.constant 0 : index
    %36 = vector.load %arg3[%c0_18, %c0_19] : memref<16x16xf32, #tpu.memory_space<vmem>>, vector<16x16xf32>
    %cst_20 = arith.constant dense<0.000000e+00> : vector<16x16xf32>
    %37 = tpu.matmul %36, %35, %cst_20 {dimension_numbers = #tpu.dot_dimension_numbers<[1], [0], [0], [1], [0, 0, 1, 1], [], []>} : vector<16x16xf32>, vector<16x16xf32>, vector<16x16xf32> -> vector<16x16xf32>
    %38 = vector.broadcast %3 : vector<16x1xf32> to vector<16x16xf32>
    %39 = arith.addf %37, %38 : vector<16x16xf32>
    %cst_21 = arith.constant 0.000000e+00 : f32
    %40 = vector.broadcast %cst_21 : f32 to vector<16x16xf32>
    %41 = arith.maximumf %39, %40 : vector<16x16xf32>
    %cst_22 = arith.constant dense<0.000000e+00> : vector<16xf32>
    %42 = vector.multi_reduction <add>, %41, %cst_22 [1] : vector<16x16xf32> to vector<16xf32>
    %43 = vector.shape_cast %42 : vector<16xf32> to vector<16x1xf32>
    %44 = arith.mulf %41, %41 : vector<16x16xf32>
    %cst_23 = arith.constant dense<0.000000e+00> : vector<16xf32>
    %45 = vector.multi_reduction <add>, %44, %cst_23 [1] : vector<16x16xf32> to vector<16xf32>
    %46 = vector.shape_cast %45 : vector<16xf32> to vector<16x1xf32>
    %cst_24 = arith.constant 6.250000e-02 : f32
    %47 = vector.broadcast %cst_24 : f32 to vector<16x1xf32>
    %48 = arith.mulf %43, %47 : vector<16x1xf32>
    %cst_25 = arith.constant 6.250000e-02 : f32
    %49 = vector.broadcast %cst_25 : f32 to vector<16x1xf32>
    %50 = arith.mulf %46, %49 : vector<16x1xf32>
    %51 = arith.mulf %48, %48 : vector<16x1xf32>
    %52 = arith.subf %50, %51 : vector<16x1xf32>
    %cst_26 = arith.constant 9.99999974E-6 : f32
    %53 = vector.broadcast %cst_26 : f32 to vector<16x1xf32>
    %54 = arith.addf %52, %53 : vector<16x1xf32>
    %55 = math.rsqrt %54 : vector<16x1xf32>
    %56 = arith.mulf %4, %55 : vector<16x1xf32>
    %57 = arith.mulf %48, %56 : vector<16x1xf32>
    %58 = arith.subf %5, %57 : vector<16x1xf32>
    %59 = vector.broadcast %56 : vector<16x1xf32> to vector<16x16xf32>
    %60 = arith.mulf %41, %59 : vector<16x16xf32>
    %61 = vector.broadcast %58 : vector<16x1xf32> to vector<16x16xf32>
    %62 = arith.addf %60, %61 : vector<16x16xf32>
    %c0_27 = arith.constant 0 : index
    %63 = memref.load %arg0[%c0_27] : memref<1xi32, #tpu.memory_space<smem>>
    %64 = tpu.iota {dimensions = array<i32: 0>} : vector<16x16xi32>
    %65 = tpu.iota {dimensions = array<i32: 1>} : vector<16x16xi32>
    %c16_i32 = arith.constant 16 : i32
    %66 = vector.broadcast %c16_i32 : i32 to vector<16x16xi32>
    %67 = arith.muli %64, %66 : vector<16x16xi32>
    %68 = arith.addi %67, %65 : vector<16x16xi32>
    %c-1640531527_i32 = arith.constant -1640531527 : i32
    %69 = arith.muli %63, %c-1640531527_i32 : i32
    %70 = vector.broadcast %69 : i32 to vector<16x16xi32>
    %71 = arith.addi %68, %70 : vector<16x16xi32>
    %c16_i32_28 = arith.constant 16 : i32
    %72 = vector.broadcast %c16_i32_28 : i32 to vector<16x16xi32>
    %73 = arith.shrui %71, %72 : vector<16x16xi32>
    %74 = arith.xori %71, %73 : vector<16x16xi32>
    %c2146121005_i32 = arith.constant 2146121005 : i32
    %75 = vector.broadcast %c2146121005_i32 : i32 to vector<16x16xi32>
    %76 = arith.muli %74, %75 : vector<16x16xi32>
    %c15_i32 = arith.constant 15 : i32
    %77 = vector.broadcast %c15_i32 : i32 to vector<16x16xi32>
    %78 = arith.shrui %76, %77 : vector<16x16xi32>
    %79 = arith.xori %76, %78 : vector<16x16xi32>
    %c-2073254261_i32 = arith.constant -2073254261 : i32
    %80 = vector.broadcast %c-2073254261_i32 : i32 to vector<16x16xi32>
    %81 = arith.muli %79, %80 : vector<16x16xi32>
    %c16_i32_29 = arith.constant 16 : i32
    %82 = vector.broadcast %c16_i32_29 : i32 to vector<16x16xi32>
    %83 = arith.shrui %81, %82 : vector<16x16xi32>
    %84 = arith.xori %81, %83 : vector<16x16xi32>
    %c8388607_i32 = arith.constant 8388607 : i32
    %85 = vector.broadcast %c8388607_i32 : i32 to vector<16x16xi32>
    %86 = arith.andi %84, %85 : vector<16x16xi32>
    %c838861_i32 = arith.constant 838861 : i32
    %87 = vector.broadcast %c838861_i32 : i32 to vector<16x16xi32>
    %88 = arith.cmpi sge, %86, %87 : vector<16x16xi32>
    %cst_30 = arith.constant 0.000000e+00 : f32
    %89 = vector.broadcast %cst_30 : f32 to vector<16x16xf32>
    %90 = arith.select %88, %62, %89 : vector<16x16xi1>, vector<16x16xf32>
    %91 = vector.broadcast %6 : vector<16x1xf32> to vector<16x16xf32>
    %92 = arith.mulf %90, %91 : vector<16x16xf32>
    %cst_31 = arith.constant dense<0.000000e+00> : vector<16xf32>
    %93 = vector.multi_reduction <add>, %92, %cst_31 [0] : vector<16x16xf32> to vector<16xf32>
    %94 = vector.shape_cast %93 : vector<16xf32> to vector<1x16xf32>
    %95 = vector.broadcast %7 : vector<1x1xf32> to vector<1x16xf32>
    %96 = arith.addf %94, %95 : vector<1x16xf32>
    %c0_32 = arith.constant 0 : index
    %c0_33 = arith.constant 0 : index
    %97 = vector.load %arg5[%c0_32, %c0_33] : memref<1x16xf32, #tpu.memory_space<vmem>>, vector<1x16xf32>
    tpu.vector_store %arg5[%c0_32, %c0_33], %96 {strides = array<i32>} : memref<1x16xf32, #tpu.memory_space<vmem>>, vector<1x16xf32>,
    return
  }
}

</mosaic_0001>

<bundles_post_ra>
// kernel: tpu_custom_call.1
= control target key start
LH: loop header
LB: loop body
LE: loop exit
PB: predicated region body
PF: predicated region fallthrough
CT: control target
= control target key end

     0   :  { %vm38_vm0 = vcmask 64512   ;;  %s625_s0 = inlined_call_operand.<no memory space> [shape: s32[1], index: 0, kind: input, shape index: {}]   ;;  %s626_s1 = inlined_call_operand.vmem [shape: f32[8,16], index: 1, kind: input, shape index: {}]   ;;  %s627_s2 = inlined_call_operand.vmem [shape: f32[16,8], index: 2, kind: input, shape index: {}]   ;;  %s628_s3 = inlined_call_operand.vmem [shape: f32[16,16], index: 3, kind: input, shape index: {}]   ;;  %s629_s4 = inlined_call_operand.vmem [shape: f32[16,8], index: 4, kind: input, shape index: {}]   ;;  %s630_s5 = inlined_call_operand.hbm [shape: f32[1,16], index: 5, kind: output, shape index: {}]  }
   0x1   :  { %v25_v0 = vld [vmem:[%s626_s1] sm:$0xff]  ;;  %v27_v2 = vld [vmem:[%s627_s2 + $0x8] sm:$0xff] }
   0x2   :  { %v26_v1 = vld [vmem:[%s627_s2] sm:$0xff]  ;;  %432 = vmatprep.subr.mxu0 %v25_v0 }
   0x3   :  { %434 = vmatprep.mubr.msk.f32.mxu0 %vm38_vm0, %v26_v1  ;;  %v552_v3 = vld [vmem:[%s629_s4] sm:$0xff] }
   0x4   :  { %11 = vsyncpa [#allocation4], 0  ;;  %433 = vmatpush3.msra.mxu0 %v25_v0  ;;  %v500_v4 = vmov 0   ;;  %v558_v5 = vld [vmem:[%s629_s4 + $0x8] sm:$0xff]  ;;  %vm122_vm1 = vcmask 130048   ;;  %v501_v20 = vmov 1  }
   0x5   :  { %458 = vset.pattern.permute.xlu0 %v500_v4  ;;  %435 = vmatmul.mubr.msk.f32.vlgmr.msra.gmra.mrb[0].mxu0 %vm38_vm0, %v27_v2  ;;  %v502_v35 = vmov 2   ;;  %s503_s2 = smov 1   ;;  %v187_v46 = vld [vmem:[%s628_s3] sm:$0xff]  ;;  %v504_v47 = vmov 3   ;;  %v188_v57 = vld [vmem:[%s628_s3 + $0x8] sm:$0xff]  ;;  %vm405_vm4 = vcmask 122880  }
   0x6   :  { %30 = vperm.xlu0 %458, %v552_v3   ;;  %459 = vset.pattern.permute.xlu1 %v501_v20  ;;  %s354_s8 = smul.u32 2654435769, %s625_s0  ;;  %s509_s0 = smov [#allocation3]  }
   0x7   :  { %441 = vmatprep.mubr.msk.f32.mxu1 %vm122_vm1, %v187_v46  ;;  %s413_s9 = sshll.u32 %s509_s0, 4  ;;  %s414_s9 = int_to_ptr.vmem [resolvable:$true] %s413_s9 }
   0x8   :  { %s476_s10 = scalar_lea.vmem %s414_s9, 16  ;;  %s480_s11 = scalar_lea.vmem %s414_s9, 32 }
   0x9   :  { %p477_p0 = scmp.ne.s32.totalorder %s414_s9, %s476_s10  ;;  %p481_p1 = scmp.lt.s32.totalorder %s414_s9, %s414_s9 }
   0xa   :  { %35 = vperm.xlu0 %458, %v558_v5   ;;  %p482_p2 = scmp.lt.s32.totalorder %s480_s11, %s476_s10 }
   0xc   :  { %p483_p3 = por %p482_p2, %p481_p1 }
   0xe   :  { %460 = vset.pattern.permute.xlu0 %v502_v35  ;;  %p484_p4 = pnand %p483_p3, %p477_p0 }
  0x85   :  { %v31_v6 = vpop.permute.xlu0 %30 }
  0x89   :  { %v36_v7 = vpop.permute.xlu0 %35 }
  0xd8   :  { %v436_v8 = vpop.f32.mrb[0].mxu0 }
  0xd9   :  { %v117_v9 = vadd.f32 %v436_v8, %v36_v7  ;;  %v111_v10 = vpop.f32.mrb[1].mxu0 }
  0xda   :  { %v112_v11 = vadd.f32 %v111_v10, %v31_v6  ;;  %v505_v10 = vmov 4  }
  0xdb   :  { %v121_v12 = vmax.f32 %v117_v9, 0.0 }
  0xdc   :  { %v120_v13 = vmax.f32 %v112_v11, 0.0 }
  0xdd   :  { %v126_v14 = vsel %vm122_vm1, %v121_v12, 0.0  ;;  %v130_v18 = vmul.f32 %v121_v12, %v121_v12 }
  0xde   :  { %127 = vadd.xlane.f32.xlu1 %v126_v14  ;;  %v129_v15 = vmul.f32 %v120_v13, %v120_v13  ;;  %v123_v17 = vsel %vm122_vm1, %v120_v13, 0.0 }
  0xdf   :  { %v134_v19 = vsel %vm122_vm1, %v130_v18, 0.0 }
  0xe0   :  { %v131_v16 = vsel %vm122_vm1, %v129_v15, 0.0 }
  0xe1   :  { %132 = vadd.xlane.f32.xlu0 %v131_v16 }
  0xe2   :  { %124 = vadd.xlane.f32.xlu1 %v123_v17 }
  0xe6   :  { %135 = vadd.xlane.f32.xlu1 %v134_v19 }
 0x16b   :  { %v128_v21 = vpop.xlane.xlu1 %127 }
 0x16c   :  { %v138_v24 = vmul.f32 0.0625, %v128_v21 }
 0x16e   :  { %v133_v22 = vpop.xlane.xlu0 %132  ;;  %v142_v29 = vmul.f32 %v138_v24, %v138_v24 }
 0x16f   :  { %v125_v23 = vpop.xlane.xlu1 %124  ;;  %v139_v26 = vmul.f32 0.0625, %v133_v22 }
 0x170   :  { %v137_v25 = vmul.f32 0.0625, %v125_v23 }
 0x172   :  { %v141_v27 = vmul.f32 %v137_v25, %v137_v25 }
 0x173   :  { %v136_v28 = vpop.xlane.xlu1 %135 }
 0x174   :  { %v143_v30 = vsub.f32 %v139_v26, %v141_v27  ;;  %v140_v31 = vmul.f32 0.0625, %v136_v28 }
 0x176   :  { %v145_v32 = vadd.f32 1e-05, %v143_v30  ;;  %v144_v33 = vsub.f32 %v140_v31, %v142_v29  ;;  %v24_v31 = vld [vmem:[%s629_s4] sm:$0x1] }
 0x178   :  { %468 = vrsqrt.f32 %v145_v32  ;;  %v146_v34 = vadd.f32 1e-05, %v144_v33  ;;  %v506_v32 = vmov 7   ;;  %v507_v33 = vmov 6  }
 0x17a   :  { %470 = vrsqrt.f32 %v146_v34  ;;  %v508_v34 = vmov 5  }
 0x182   :  { %v469_v36 = vpop.eup %468 }
 0x183   :  { %v149_v37 = vmul.f32 %v469_v36, %v552_v3 }
 0x184   :  { %v471_v38 = vpop.eup %470 }
 0x185   :  { %v151_v39 = vmul.f32 %v149_v37, %v137_v25  ;;  %v150_v40 = vmul.f32 %v471_v38, %v558_v5 }
 0x187   :  { %155 = vrot.lane.b32.xlu1 %v151_v39, %s503_s2  ;;  %v152_v41 = vmul.f32 %v150_v40, %v138_v24  ;;  %v345_v39 = vlaneseq }
 0x18b   :  { %157 = vrot.lane.b32.xlu1 %v152_v41, %s503_s2 }
 0x18f   :  { %165 = vperm.xlu1 %459, %v149_v37  }
 0x193   :  { %170 = vperm.xlu1 %459, %v150_v40   ;;  %v346_v40 = vshrl.u32 %v345_v39, 7 }
 0x195   :  { %v347_v41 = vadd.s32 8, %v346_v40 }
 0x197   :  { %461 = vset.pattern.permute.xlu1 %v502_v35 }
 0x1f9   :  { %v156_v42 = vpop.permute.xlu1 %155 }
 0x1fa   :  { %v161_v43 = vsub.f32 %v552_v3, %v156_v42  ;;  %v350_v42 = vmul.u32 16, %v346_v40 }
 0x1fc   :  { %177 = vperm.xlu0 %460, %v161_v43   ;;  %v349_v43 = vand.u32 127, %v345_v39 }
 0x1fd   :  { %v158_v44 = vpop.permute.xlu1 %157 }
 0x1fe   :  { %v162_v45 = vsub.f32 %v558_v5, %v158_v44  ;;  %v351_v44 = vmul.u32 16, %v347_v41 }
 0x200   :  { %182 = vperm.xlu1 %461, %v162_v45   ;;  %467 = vset.pattern.permute.xlu0 %v506_v32  ;;  %v352_v45 = vadd.s32 %v350_v42, %v349_v43  ;;  %v353_v46 = vadd.s32 %v351_v44, %v349_v43 }
 0x204   :  { %462 = vset.pattern.permute.xlu1 %v504_v47  ;;  %v355_v47 = vstv %s354_s8 }
 0x205   :  { %190 = vperm.xlu1 %462, %v552_v3  }
 0x209   :  { %194 = vperm.xlu1 %462, %v558_v5  }
 0x20d   :  { %463 = vset.pattern.permute.xlu1 %v505_v10 }
 0x20e   :  { %v166_v48 = vpop.permute.xlu1 %165 }
 0x20f   :  { %v173_v51 = vmul.f32 %v166_v48, %v120_v13  ;;  %v356_v48 = vadd.s32 %v355_v47, %v352_v45 }
 0x212   :  { %v171_v49 = vpop.permute.xlu1 %170 }
 0x213   :  { %v174_v52 = vmul.f32 %v171_v49, %v121_v12  ;;  %v357_v49 = vadd.s32 %v355_v47, %v353_v46 }
 0x27b   :  { %v178_v50 = vpop.permute.xlu0 %177 }
 0x27c   :  { %v185_v54 = vadd.f32 %v178_v50, %v173_v51  ;;  %v359_v50 = vshrl.u32 %v357_v49, 16 }
 0x27f   :  { %v183_v53 = vpop.permute.xlu1 %182 }
 0x280   :  { %v186_v55 = vadd.f32 %v183_v53, %v174_v52  ;;  %v361_v52 = vxor.u32 %v359_v50, %v357_v49 }
 0x282   :  { %v444_v56 = vpack.c.bf16 %v186_v55, %v185_v54  ;;  %v363_v53 = vmul.u32 2146121005, %v361_v52 }
 0x284   :  { %445 = vmatprep.subr.bf16.mxu1 %v444_v56  ;;  %v191_v58 = vpop.permute.xlu1 %190  ;;  %v365_v55 = vshrl.u32 %v363_v53, 15 }
 0x285   :  { %447 = vmatpush3.bf16.msra.mxu1 %v444_v56 }
 0x288   :  { %442 = vmatmul.mubr.msk.f32.vlgmr.msra.gmra.mrb[0].mxu1 %vm122_vm1, %v188_v57  ;;  %v195_v59 = vpop.permute.xlu1 %194 }
 0x35b   :  { %v443_v60 = vpop.f32.mrb[0].mxu1 }
 0x35c   :  { %v275_v61 = vadd.f32 %v443_v60, %v195_v59  ;;  %v269_v62 = vpop.f32.mrb[1].mxu1 }
 0x35d   :  { %v270_v63 = vadd.f32 %v269_v62, %v191_v58  ;;  %v367_v58 = vxor.u32 %v365_v55, %v363_v53 }
 0x35e   :  { %v581_v0 = vmax.f32 %v275_v61, 0.0 }
 0x35f   :  { %v583_v1 = vmax.f32 %v270_v63, 0.0  ;;  %v369_v61 = vmul.u32 2221713035, %v367_v58 }
 0x360   :  { %v283_v2 = vsel %vm122_vm1, %v581_v0, 0.0  ;;  %v287_v8 = vmul.f32 %v581_v0, %v581_v0 }
 0x361   :  { %284 = vadd.xlane.f32.xlu0 %v283_v2  ;;  %v280_v4 = vsel %vm122_vm1, %v583_v1, 0.0  ;;  %v286_v6 = vmul.f32 %v583_v1, %v583_v1  ;;  %v371_v2 = vshrl.u32 %v369_v61, 16 }
 0x362   :  { %281 = vadd.xlane.f32.xlu1 %v280_v4  ;;  %v291_v9 = vsel %vm122_vm1, %v287_v8, 0.0 }
 0x363   :  { %v288_v7 = vsel %vm122_vm1, %v286_v6, 0.0  ;;  %v373_v6 = vxor.u32 %v371_v2, %v369_v61 }
 0x366   :  { %289 = vadd.xlane.f32.xlu1 %v288_v7 }
 0x36a   :  { %292 = vadd.xlane.f32.xlu1 %v291_v9  ;;  %v375_v9 = vand.u32 8388607, %v373_v6 }
 0x36c   :  { %vm377_vm3 = vcmp.ge.s32.totalorder %v375_v9, 838861 }
 0x3ee   :  { %v285_v13 = vpop.xlane.xlu0 %284 }
 0x3ef   :  { %v282_v11 = vpop.xlane.xlu1 %281  ;;  %v295_v15 = vmul.f32 0.0625, %v285_v13 }
 0x3f0   :  { %v294_v12 = vmul.f32 0.0625, %v282_v11 }
 0x3f1   :  { %v299_v20 = vmul.f32 %v295_v15, %v295_v15 }
 0x3f2   :  { %v298_v16 = vmul.f32 %v294_v12, %v294_v12 }
 0x3f3   :  { %v290_v14 = vpop.xlane.xlu1 %289 }
 0x3f4   :  { %v296_v17 = vmul.f32 0.0625, %v290_v14 }
 0x3f6   :  { %v300_v18 = vsub.f32 %v296_v17, %v298_v16 }
 0x3f7   :  { %v293_v19 = vpop.xlane.xlu1 %292 }
 0x3f8   :  { %v302_v21 = vadd.f32 1e-05, %v300_v18  ;;  %v297_v22 = vmul.f32 0.0625, %v293_v19 }
 0x3fa   :  { %472 = vrsqrt.f32 %v302_v21  ;;  %v301_v23 = vsub.f32 %v297_v22, %v299_v20 }
 0x3fc   :  { %v303_v24 = vadd.f32 1e-05, %v301_v23 }
 0x3fe   :  { %474 = vrsqrt.f32 %v303_v24 }
 0x404   :  { %v473_v25 = vpop.eup %472 }
 0x405   :  { %v306_v26 = vmul.f32 %v473_v25, %v552_v3 }
 0x407   :  { %v308_v27 = vmul.f32 %v306_v26, %v294_v12 }
 0x408   :  { %v475_v28 = vpop.eup %474 }
 0x409   :  { %312 = vrot.lane.b32.xlu1 %v308_v27, %s503_s2  ;;  %v307_v29 = vmul.f32 %v475_v28, %v558_v5 }
 0x40b   :  { %v309_v30 = vmul.f32 %v307_v29, %v295_v15 }
 0x40d   :  { %322 = vperm.xlu1 %463, %v306_v26   ;;  %314 = vrot.lane.b32.xlu0 %v309_v30, %s503_s2 }
 0x411   :  { %327 = vperm.xlu1 %463, %v307_v29   ;;  %401 = vperm.xlu0 %467, %v24_v31  }
 0x415   :  { %464 = vset.pattern.permute.xlu1 %v507_v33 }
 0x416   :  { %381 = vperm.xlu1 %464, %v552_v3  }
 0x41a   :  { %465 = vset.pattern.permute.xlu1 %v508_v34 }
 0x47b   :  { %v313_v37 = vpop.permute.xlu1 %312 }
 0x47c   :  { %v318_v38 = vsub.f32 %v552_v3, %v313_v37  ;;  %v358_v3 = vshrl.u32 %v356_v48, 16 }
 0x47e   :  { %v360_v51 = vxor.u32 %v358_v3, %v356_v48 }
 0x47f   :  { %v315_v35 = vpop.permute.xlu0 %314 }
 0x480   :  { %v319_v36 = vsub.f32 %v558_v5, %v315_v35 }
 0x482   :  { %339 = vperm.xlu1 %465, %v319_v36  }
 0x486   :  { %334 = vperm.xlu1 %465, %v318_v38  }
 0x48a   :  { %466 = vset.pattern.permute.xlu1 %v507_v33 }
 0x48b   :  { %385 = vperm.xlu1 %466, %v558_v5   ;;  %v362_v5 = vmul.u32 2146121005, %v360_v51 }
 0x48c   :  { %v323_v56 = vpop.permute.xlu1 %322 }
 0x48d   :  { %v364_v54 = vshrl.u32 %v362_v5, 15  ;;  %v330_v10 = vmul.f32 %v323_v56, %v583_v1 }
 0x48f   :  { %v366_v57 = vxor.u32 %v364_v54, %v362_v5 }
 0x490   :  { %v328_v60 = vpop.permute.xlu1 %327  ;;  %v402_v26 = vpop.permute.xlu0 %401 }
 0x491   :  { %v368_v59 = vmul.u32 2221713035, %v366_v57  ;;  %v331_v11 = vmul.f32 %v328_v60, %v581_v0 }
 0x493   :  { %v370_v62 = vshrl.u32 %v368_v59, 16 }
 0x495   :  { %v382_v63 = vpop.permute.xlu1 %381  ;;  %v372_v4 = vxor.u32 %v370_v62, %v368_v59 }
 0x497   :  { %v374_v8 = vand.u32 8388607, %v372_v4 }
 0x499   :  { %vm376_vm2 = vcmp.ge.s32.totalorder %v374_v8, 838861 }
 0x501   :  { %v340_v7 = vpop.permute.xlu1 %339 }
 0x502   :  { %v343_v13 = vadd.f32 %v340_v7, %v331_v11 }
 0x504   :  { %v379_v17 = vsel %vm377_vm3, %v343_v13, 0.0 }
 0x505   :  { %v335_v12 = vpop.permute.xlu1 %334 }
 0x506   :  { %v342_v14 = vadd.f32 %v335_v12, %v330_v10 }
 0x508   :  { %v378_v15 = vsel %vm376_vm2, %v342_v14, 0.0 }
 0x509   :  { %v388_v16 = vmul.f32 %v382_v63, %v378_v15 }
 0x50a   :  { %v386_v18 = vpop.permute.xlu1 %385 }
 0x50b   :  { %v389_v19 = vmul.f32 %v386_v18, %v379_v17  ;;  %v390_v20 = vsel %vm122_vm1, %v388_v16, 0.0 }
 0x50d   :  { %v391_v21 = vsel %vm122_vm1, %v389_v19, 0.0 }
 0x50e   :  { %v392_v22 = vadd.f32 %v391_v21, %v390_v20 }
 0x510   :  { %v393_v23 = vrot.slane %v392_v22, 4 }
 0x512   :  { %v394_v24 = vadd.f32 %v393_v23, %v392_v22 }
 0x514   :  { %v395_v1 = vrot.slane %v394_v24, 2 }
 0x516   :  { %v396_v25 = vadd.f32 %v395_v1, %v394_v24 }
 0x518   :  { %v397_v0 = vrot.slane %v396_v25, 1 }
 0x51a   :  { %v398_v27 = vadd.f32 %v397_v0, %v396_v25 }
 0x51c   :  { %v404_v28 = vadd.f32 %v402_v26, %v398_v27 }
 0x51e   :  { %406 = vst.msk [vmem:[#allocation3] sm:$0x1] %vm405_vm4, %v404_v28 }
 0x51f   :  { %487 = shalt.err (!%p484_p4)
}
 0x520   :  { %s488_s14 = scalar_lea.hbm %s630_s5, 16 }
 0x521   :  { %p489_p5 = scmp.ne.s32.totalorder %s630_s5, %s488_s14  ;;  %p492_p6 = scmp.lt.u32.totalorder %s488_s14, %s630_s5 }
 0x523   :  { %p494_p7 = pnand %p492_p6, %p489_p5 }
 0x525   :  { %497 = shalt.err (!%p494_p7)
}
 0x526   :  { %416 = dma.vmem_to_hbm [thread:$0]  %s414_s9, 16, %s630_s5, [#allocation4]  }
 0x527   :  { %498 = dma.done.wait [#allocation4], 16  }
 0x528   :  { %499 = vsyncadd [#allocation4], 4294967280 }
 0x529   :  { %420 = vsyncpa [#allocation4], 1 }

</bundles_post_ra>
